<compile_context>
chip_gen: v6e
topology: v6e:2x2x1
jax: 0.10.0
libtpu: 0.0.40
codegen_flags: <defaults>
</compile_context>

<pallas_src>
import jax
import jax.numpy as jnp
from jax.experimental import pallas as pl
from jax.experimental.pallas import tpu as pltpu

LANE = 128


def _round_up(x, m):
    return ((x + m - 1) // m) * m


def _pad_to(x, axis, size):
    pad = size - x.shape[axis]
    if pad <= 0:
        return x
    widths = [(0, 0)] * x.ndim
    widths[axis] = (0, pad)
    return jnp.pad(x, widths)


# ----------------------------------------------------------------------------- kernel

def _fused_gnn_kernel(h0_ref, a_ref, ed_ref, w1_ref, lc_ref, w2_ref, b2_ref,
                      o_ref, h_ref):
    # Grid = (B, L): axis 0 = graph ("parallel"), axis 1 = GIN layer ("arbitrary").
    # h0_ref : (1, N, Dp)   bf16  input-embedded node features of this graph
    # a_ref  : (1, N, N)    bf16  dense adjacency counts (dst x src) of this graph
    # ed_ref : (1, N, 2)    f32   [:, 0] = per-node sum of incoming edge_attr, [:, 1] = in-degree
    # w1_ref : (1, Dp, 2Dp) bf16  W1x with eval-BN scale folded into its columns
    # lc_ref : (1, 3, 2Dp)  f32   rows: (We@W1e)*s, (be@W1e)*s, b1*s + shift
    # w2_ref : (1, 2Dp, Dp) bf16
    # b2_ref : (1, 1, Dp)   f32
    # o_ref  : (1, N, Dp)   f32   final node representation (JK='last')
    # h_ref  : (N, Dp)      bf16  VMEM-resident node state carried across layers
    layer = pl.program_id(1)
    last = pl.num_programs(1) - 1

    @pl.when(layer == 0)
    def _():
        h_ref[...] = h0_ref[0]

    # Neighbour aggregation over incoming edges of this graph (MXU, f32 accumulation).
    aggr_x = jnp.dot(a_ref[0], h_ref[...], preferred_element_type=jnp.float32)   # (N, Dp)

    # edge_encoder(Linear(1,D)) + scatter-add + W1e + BN affine, all folded into two
    # broadcast FMAs (VPU):  bias = easum*(We@W1e)*s + deg*(be@W1e)*s + (b1*s + shift)
    ed = ed_ref[0]                                    # (N, 2)
    lc = lc_ref[0]                                    # (3, 2Dp)
    bias = ed[:, 0:1] * lc[0:1, :] + ed[:, 1:2] * lc[1:2, :] + lc[2:3, :]         # (N, 2Dp)

    # mlp: Linear(2D,2D) (BN folded) -> ReLU -> Linear(2D,D)
    t = jnp.dot(aggr_x.astype(jnp.bfloat16), w1_ref[0],
                preferred_element_type=jnp.float32) + bias
    t = jnp.maximum(t, 0.0)
    h_new = jnp.dot(t.astype(jnp.bfloat16), w2_ref[0],
                    preferred_element_type=jnp.float32) + b2_ref[0]               # (N, Dp)

    @pl.when(layer == last)
    def _():
        o_ref[0] = h_new                              # no ReLU after the final layer

    @pl.when(layer < last)
    def _():
        h_ref[...] = jnp.maximum(h_new, 0.0).astype(jnp.bfloat16)


# ----------------------------------------------------------------------------- wrapper

def _precompute_graph(edge_index, edge_attr, N):
    """Per-graph dense adjacency counts + packed [edge_attr sum, in-degree] (O(B*N^2))."""
    src = edge_index[:, 0, :]                                            # (B, E)
    dst = edge_index[:, 1, :]                                            # (B, E)
    St = jnp.swapaxes(jax.nn.one_hot(dst, N, dtype=jnp.float32), 1, 2)   # (B, N, E)
    G = jax.nn.one_hot(src, N, dtype=jnp.float32)                        # (B, E, N)
    A = jnp.matmul(St, G)                                                # (B, N, N)
    ea_sum = jnp.matmul(St, edge_attr.astype(jnp.float32))               # (B, N, 1)
    deg = jnp.sum(St, axis=-1, keepdims=True)                            # (B, N, 1)
    ed = jnp.concatenate([ea_sum, deg], axis=-1)                         # (B, N, 2)
    return A, ed


def gnn_forward(params, x, edge_index, edge_attr):
    B, N, _ = x.shape
    L, _, D2 = params["b1"].shape
    D = D2 // 2
    Dp = _round_up(D, LANE)            # lane-dense hidden width (zero padding is exact)
    D2p = 2 * Dp

    A, ed = _precompute_graph(edge_index, edge_attr, N)
    A = A.astype(jnp.bfloat16)         # small integer counts: exact in bf16

    # Layer-0 input embedding in plain XLA (keeps the unaligned F_in=21 contraction and
    # a once-used buffer out of the per-layer kernel).
    h0 = jnp.matmul(x.astype(jnp.float32), params["Win"]) + params["bin"]   # (B, N, D)
    h0 = _pad_to(h0, 2, Dp).astype(jnp.bfloat16)

    # Fold edge path and eval-mode BatchNorm affine into the first linear (f32 folding).
    s, c = params["bn_scale"], params["bn_shift"]                           # (L, 1, 2D)
    W1x = _pad_to(_pad_to(params["W1x"] * s, 1, Dp), 2, D2p).astype(jnp.bfloat16)
    we_w1e = jnp.einsum('lod,lde->loe', params["We"], params["W1e"]) * s    # (L, 1, 2D)
    be_w1e = jnp.einsum('lod,lde->loe', params["be"], params["W1e"]) * s    # (L, 1, 2D)
    b1f = params["b1"] * s + c                                              # (L, 1, 2D)
    lc = _pad_to(jnp.concatenate([we_w1e, be_w1e, b1f], axis=1), 2, D2p)    # (L, 3, 2Dp)
    W2 = _pad_to(_pad_to(params["W2"], 1, D2p), 2, Dp).astype(jnp.bfloat16)
    b2 = _pad_to(params["b2"], 2, Dp)

    out = pl.pallas_call(
        _fused_gnn_kernel,
        out_shape=jax.ShapeDtypeStruct((B, N, Dp), jnp.float32),
        grid_spec=pltpu.PrefetchScalarGridSpec(
            num_scalar_prefetch=0,
            grid=(B, L),
            in_specs=[
                pl.BlockSpec((1, N, Dp), lambda b, l: (b, 0, 0)),     # h0
                pl.BlockSpec((1, N, N), lambda b, l: (b, 0, 0)),      # adjacency
                pl.BlockSpec((1, N, 2), lambda b, l: (b, 0, 0)),      # [easum, deg]
                pl.BlockSpec((1, Dp, D2p), lambda b, l: (l, 0, 0)),   # W1x (BN folded)
                pl.BlockSpec((1, 3, D2p), lambda b, l: (l, 0, 0)),    # bias rows
                pl.BlockSpec((1, D2p, Dp), lambda b, l: (l, 0, 0)),   # W2
                pl.BlockSpec((1, 1, Dp), lambda b, l: (l, 0, 0)),     # b2
            ],
            out_specs=pl.BlockSpec((1, N, Dp), lambda b, l: (b, 0, 0)),
            scratch_shapes=[pltpu.VMEM((N, Dp), jnp.bfloat16)],
        ),
        compiler_params=pltpu.CompilerParams(
            dimension_semantics=("parallel", "arbitrary"),
            vmem_limit_bytes=48 * 1024 * 1024,
        ),
    )(h0, A, ed, W1x, lc, W2, b2)

    return out[..., :D]                                                  # drop lane padding


# ----------------------------------------------------------------------------- reference

def gnn_reference(params, x, edge_index, edge_attr):
    """Pure-JAX f32 reference matching the PyTorch GNN forward (for the tolerance check)."""
    B, N, _ = x.shape
    L = params["b1"].shape[0]
    src = edge_index[:, 0, :]
    dst = edge_index[:, 1, :]
    St = jnp.swapaxes(jax.nn.one_hot(dst, N, dtype=jnp.float32), 1, 2)   # (B, N, E)
    G = jax.nn.one_hot(src, N, dtype=jnp.float32)                        # (B, E, N)
    A = jnp.matmul(St, G)                                                # (B, N, N)
    ea = edge_attr.astype(jnp.float32)

    h = jnp.matmul(x.astype(jnp.float32), params["Win"]) + params["bin"]
    for l in range(L):
        e_emb = jnp.matmul(ea, params["We"][l]) + params["be"][l]        # (B, E, D)
        aggr_x = jnp.einsum('bnm,bmd->bnd', A, h)
        aggr_e = jnp.einsum('bne,bed->bnd', St, e_emb)
        t = (jnp.matmul(aggr_x, params["W1x"][l])
             + jnp.matmul(aggr_e, params["W1e"][l]) + params["b1"][l])
        t = t * params["bn_scale"][l] + params["bn_shift"][l]
        t = jnp.maximum(t, 0.0)
        h_new = jnp.matmul(t, params["W2"][l]) + params["b2"][l]
        h = h_new if l == L - 1 else jnp.maximum(h_new, 0.0)
    return h


# ----------------------------------------------------------------------------- params

def _torch_linear_init(key, fan_in, fan_out):
    # PyTorch nn.Linear default: U(-1/sqrt(fan_in), 1/sqrt(fan_in)); stored transposed
    # as (fan_in, fan_out) so kernels compute x @ W.
    kw, kb = jax.random.split(key)
    bound = 1.0 / jnp.sqrt(jnp.float32(fan_in))
    W = jax.random.uniform(kw, (fan_in, fan_out), jnp.float32, -bound, bound)
    b = jax.random.uniform(kb, (fan_out,), jnp.float32, -bound, bound)
    return W, b


def init_params(key, num_layer, emb_dim, in_feat=21):
    D, D2 = emb_dim, 2 * emb_dim
    eps = 1e-5
    W1x, W1e, W2s, b1s, b2s, Wes, bes = [], [], [], [], [], [], []
    for _ in range(num_layer):
        key, k_e, k_1, k_2 = jax.random.split(key, 4)
        We_l, be_l = _torch_linear_init(k_e, 1, D)        # edge_encoder
        W1_l, b1_l = _torch_linear_init(k_1, D2, D2)      # mlp[0]
        W2_l, b2_l = _torch_linear_init(k_2, D2, D)       # mlp[3]
        W1x.append(W1_l[:D, :])                           # acts on aggregated x_j
        W1e.append(W1_l[D:, :])                           # acts on aggregated edge emb
        W2s.append(W2_l)
        b1s.append(b1_l.reshape(1, D2))
        b2s.append(b2_l.reshape(1, D))
        Wes.append(We_l.reshape(1, D))
        bes.append(be_l.reshape(1, D))
    # input_node_embeddings (layer 0): xavier_uniform_ weight, default-uniform bias
    key, k_in = jax.random.split(key)
    kw, kb = jax.random.split(k_in)
    x_bound = jnp.sqrt(6.0 / jnp.float32(in_feat + D))
    Win = jax.random.uniform(kw, (in_feat, D), jnp.float32, -x_bound, x_bound)
    b_bound = 1.0 / jnp.sqrt(jnp.float32(in_feat))
    bin_ = jax.random.uniform(kb, (1, D), jnp.float32, -b_bound, b_bound)
    # BatchNorm1d(2D), eval mode with default running stats: gamma=1, beta=0, mean=0, var=1
    bn_scale = jnp.full((num_layer, 1, D2), 1.0 / jnp.sqrt(1.0 + eps), jnp.float32)
    bn_shift = jnp.zeros((num_layer, 1, D2), jnp.float32)
    return dict(
        Win=Win, bin=bin_,
        W1x=jnp.stack(W1x), W1e=jnp.stack(W1e), W2=jnp.stack(W2s),
        b1=jnp.stack(b1s), b2=jnp.stack(b2s),
        We=jnp.stack(Wes), be=jnp.stack(bes),
        bn_scale=bn_scale, bn_shift=bn_shift,
    )


# ----------------------------------------------------------------------------- main

if __name__ == "__main__":
    B, N, E = 2, 16, 32
    emb_dim, num_layer, in_feat = 32, 2, 21

    key = jax.random.PRNGKey(0)
    k_x, k_ei, k_ea, k_p = jax.random.split(key, 4)

    x = jax.random.normal(k_x, (B, N, in_feat), jnp.float32)
    edge_index = jax.random.randint(k_ei, (B, 2, E), 0, N, jnp.int32)
    edge_attr = jax.random.normal(k_ea, (B, E, 1), jnp.float32)

    params = init_params(k_p, num_layer, emb_dim, in_feat)

    fwd = jax.jit(gnn_forward)
    out = jax.block_until_ready(fwd(params, x, edge_index, edge_attr))
    assert out.shape == (B, N, emb_dim), out.shape

    ref = gnn_reference(params, x, edge_index, edge_attr)
    max_err = float(jnp.max(jnp.abs(out - ref)))
    assert jnp.allclose(out, ref, atol=5e-2, rtol=5e-2), max_err

    print("KERNEL_OK")
</pallas_src>

<mosaic_0001>
module attributes {stable_mosaic.version = 11 : i64} {
  func.func @_fused_gnn_kernel(%arg0: i32, %arg1: i32, %arg2: memref<1x16x128xbf16, #tpu.memory_space<vmem>>, %arg3: memref<1x16x16xbf16, #tpu.memory_space<vmem>>, %arg4: memref<1x16x2xf32, #tpu.memory_space<vmem>>, %arg5: memref<1x128x256xbf16, #tpu.memory_space<vmem>>, %arg6: memref<1x3x256xf32, #tpu.memory_space<vmem>>, %arg7: memref<1x256x128xbf16, #tpu.memory_space<vmem>>, %arg8: memref<1x1x128xf32, #tpu.memory_space<vmem>>, %arg9: memref<1x16x128xf32, #tpu.memory_space<vmem>>, %arg10: memref<16x128xbf16, #tpu.memory_space<vmem>>) attributes {dimension_semantics = [#tpu.dimension_semantics<parallel>, #tpu.dimension_semantics<arbitrary>], iteration_bounds = array<i64: 2, 2>, scalar_prefetch = 0 : i64, scratch_operands = 1 : i64, tpu.core_type = #tpu.core_type<tc>, window_params = [{transform_indices = @transform_0, window_bounds = array<i64: 1, 16, 128>}, {transform_indices = @transform_1, window_bounds = array<i64: 1, 16, 16>}, {transform_indices = @transform_2, window_bounds = array<i64: 1, 16, 2>}, {transform_indices = @transform_3, window_bounds = array<i64: 1, 128, 256>}, {transform_indices = @transform_4, window_bounds = array<i64: 1, 3, 256>}, {transform_indices = @transform_5, window_bounds = array<i64: 1, 256, 128>}, {transform_indices = @transform_6, window_bounds = array<i64: 1, 1, 128>}, {transform_indices = @transform_7, window_bounds = array<i64: 1, 16, 128>}]} {
    %c0_i32 = arith.constant 0 : i32
    %0 = arith.cmpi eq, %arg1, %c0_i32 : i32
    %1 = arith.extui %0 : i1 to i32
    %c0_i32_0 = arith.constant 0 : i32
    %2 = arith.cmpi ne, %1, %c0_i32_0 : i32
    scf.if %2 {
      %c0_26 = arith.constant 0 : index
      %c0_27 = arith.constant 0 : index
      %c0_28 = arith.constant 0 : index
      %46 = vector.load %arg2[%c0_26, %c0_27, %c0_28] : memref<1x16x128xbf16, #tpu.memory_space<vmem>>, vector<1x16x128xbf16>
      %47 = vector.shape_cast %46 : vector<1x16x128xbf16> to vector<16x128xbf16>
      %c0_29 = arith.constant 0 : index
      %c0_30 = arith.constant 0 : index
      %48 = vector.load %arg10[%c0_29, %c0_30] : memref<16x128xbf16, #tpu.memory_space<vmem>>, vector<16x128xbf16>
      tpu.vector_store %arg10[%c0_29, %c0_30], %47 {strides = array<i32>} : memref<16x128xbf16, #tpu.memory_space<vmem>>, vector<16x128xbf16>,
    } else {
    }
    %c0 = arith.constant 0 : index
    %c0_1 = arith.constant 0 : index
    %c0_2 = arith.constant 0 : index
    %3 = vector.load %arg3[%c0, %c0_1, %c0_2] : memref<1x16x16xbf16, #tpu.memory_space<vmem>>, vector<1x16x16xbf16>
    %4 = vector.shape_cast %3 : vector<1x16x16xbf16> to vector<16x16xbf16>
    %c0_3 = arith.constant 0 : index
    %c0_4 = arith.constant 0 : index
    %5 = vector.load %arg10[%c0_3, %c0_4] : memref<16x128xbf16, #tpu.memory_space<vmem>>, vector<16x128xbf16>
    %cst = arith.constant dense<0.000000e+00> : vector<16x128xf32>
    %6 = tpu.matmul %4, %5, %cst {dimension_numbers = #tpu.dot_dimension_numbers<[1], [0], [0], [1], [0, 0, 1, 1], [], []>} : vector<16x16xbf16>, vector<16x128xbf16>, vector<16x128xf32> -> vector<16x128xf32>
    %c0_5 = arith.constant 0 : index
    %c0_6 = arith.constant 0 : index
    %c0_7 = arith.constant 0 : index
    %7 = vector.load %arg4[%c0_5, %c0_6, %c0_7] : memref<1x16x2xf32, #tpu.memory_space<vmem>>, vector<1x16x2xf32>
    %8 = vector.shape_cast %7 : vector<1x16x2xf32> to vector<16x2xf32>
    %c0_8 = arith.constant 0 : index
    %c0_9 = arith.constant 0 : index
    %c0_10 = arith.constant 0 : index
    %9 = vector.load %arg6[%c0_8, %c0_9, %c0_10] : memref<1x3x256xf32, #tpu.memory_space<vmem>>, vector<1x3x256xf32>
    %10 = vector.shape_cast %9 : vector<1x3x256xf32> to vector<3x256xf32>
    %11 = vector.extract_strided_slice %8 {offsets = [0, 0], sizes = [16, 1], strides = [1, 1]} : vector<16x2xf32> to vector<16x1xf32>
    %12 = vector.extract_strided_slice %10 {offsets = [0, 0], sizes = [1, 256], strides = [1, 1]} : vector<3x256xf32> to vector<1x256xf32>
    %13 = vector.broadcast %11 : vector<16x1xf32> to vector<16x256xf32>
    %14 = vector.broadcast %12 : vector<1x256xf32> to vector<16x256xf32>
    %15 = arith.mulf %13, %14 : vector<16x256xf32>
    %16 = vector.extract_strided_slice %8 {offsets = [0, 1], sizes = [16, 1], strides = [1, 1]} : vector<16x2xf32> to vector<16x1xf32>
    %17 = vector.extract_strided_slice %10 {offsets = [1, 0], sizes = [1, 256], strides = [1, 1]} : vector<3x256xf32> to vector<1x256xf32>
    %18 = vector.broadcast %16 : vector<16x1xf32> to vector<16x256xf32>
    %19 = vector.broadcast %17 : vector<1x256xf32> to vector<16x256xf32>
    %20 = arith.mulf %18, %19 : vector<16x256xf32>
    %21 = arith.addf %15, %20 : vector<16x256xf32>
    %22 = vector.extract_strided_slice %10 {offsets = [2, 0], sizes = [1, 256], strides = [1, 1]} : vector<3x256xf32> to vector<1x256xf32>
    %23 = vector.broadcast %22 : vector<1x256xf32> to vector<16x256xf32>
    %24 = arith.addf %21, %23 : vector<16x256xf32>
    %25 = arith.truncf %6 : vector<16x128xf32> to vector<16x128xbf16>
    %c0_11 = arith.constant 0 : index
    %c0_12 = arith.constant 0 : index
    %c0_13 = arith.constant 0 : index
    %26 = vector.load %arg5[%c0_11, %c0_12, %c0_13] : memref<1x128x256xbf16, #tpu.memory_space<vmem>>, vector<1x128x256xbf16>
    %27 = vector.shape_cast %26 : vector<1x128x256xbf16> to vector<128x256xbf16>
    %cst_14 = arith.constant dense<0.000000e+00> : vector<16x256xf32>
    %28 = tpu.matmul %25, %27, %cst_14 {dimension_numbers = #tpu.dot_dimension_numbers<[1], [0], [0], [1], [0, 0, 1, 1], [], []>} : vector<16x128xbf16>, vector<128x256xbf16>, vector<16x256xf32> -> vector<16x256xf32>
    %29 = arith.addf %28, %24 : vector<16x256xf32>
    %cst_15 = arith.constant 0.000000e+00 : f32
    %30 = vector.broadcast %cst_15 : f32 to vector<16x256xf32>
    %31 = arith.maximumf %29, %30 : vector<16x256xf32>
    %32 = arith.truncf %31 : vector<16x256xf32> to vector<16x256xbf16>
    %c0_16 = arith.constant 0 : index
    %c0_17 = arith.constant 0 : index
    %c0_18 = arith.constant 0 : index
    %33 = vector.load %arg7[%c0_16, %c0_17, %c0_18] : memref<1x256x128xbf16, #tpu.memory_space<vmem>>, vector<1x256x128xbf16>
    %34 = vector.shape_cast %33 : vector<1x256x128xbf16> to vector<256x128xbf16>
    %cst_19 = arith.constant dense<0.000000e+00> : vector<16x128xf32>
    %35 = tpu.matmul %32, %34, %cst_19 {dimension_numbers = #tpu.dot_dimension_numbers<[1], [0], [0], [1], [0, 0, 1, 1], [], []>} : vector<16x256xbf16>, vector<256x128xbf16>, vector<16x128xf32> -> vector<16x128xf32>
    %c0_20 = arith.constant 0 : index
    %c0_21 = arith.constant 0 : index
    %c0_22 = arith.constant 0 : index
    %36 = vector.load %arg8[%c0_20, %c0_21, %c0_22] : memref<1x1x128xf32, #tpu.memory_space<vmem>>, vector<1x1x128xf32>
    %37 = vector.shape_cast %36 : vector<1x1x128xf32> to vector<1x128xf32>
    %38 = vector.broadcast %37 : vector<1x128xf32> to vector<16x128xf32>
    %39 = arith.addf %35, %38 : vector<16x128xf32>
    %c1_i32 = arith.constant 1 : i32
    %40 = arith.cmpi eq, %arg1, %c1_i32 : i32
    %41 = arith.extui %40 : i1 to i32
    %c0_i32_23 = arith.constant 0 : i32
    %42 = arith.cmpi ne, %41, %c0_i32_23 : i32
    scf.if %42 {
      %c0_26 = arith.constant 0 : index
      %c0_27 = arith.constant 0 : index
      %c0_28 = arith.constant 0 : index
      %46 = vector.load %arg9[%c0_26, %c0_27, %c0_28] : memref<1x16x128xf32, #tpu.memory_space<vmem>>, vector<1x16x128xf32>
      %47 = vector.shape_cast %46 : vector<1x16x128xf32> to vector<16x128xf32>
      %48 = vector.shape_cast %39 : vector<16x128xf32> to vector<1x16x128xf32>
      tpu.vector_store %arg9[%c0_26, %c0_27, %c0_28], %48 {strides = array<i32>} : memref<1x16x128xf32, #tpu.memory_space<vmem>>, vector<1x16x128xf32>,
    } else {
    }
    %c1_i32_24 = arith.constant 1 : i32
    %43 = arith.cmpi slt, %arg1, %c1_i32_24 : i32
    %44 = arith.extui %43 : i1 to i32
    %c0_i32_25 = arith.constant 0 : i32
    %45 = arith.cmpi ne, %44, %c0_i32_25 : i32
    scf.if %45 {
      %cst_26 = arith.constant 0.000000e+00 : f32
      %46 = vector.broadcast %cst_26 : f32 to vector<16x128xf32>
      %47 = arith.maximumf %39, %46 : vector<16x128xf32>
      %48 = arith.truncf %47 : vector<16x128xf32> to vector<16x128xbf16>
      %c0_27 = arith.constant 0 : index
      %c0_28 = arith.constant 0 : index
      %49 = vector.load %arg10[%c0_27, %c0_28] : memref<16x128xbf16, #tpu.memory_space<vmem>>, vector<16x128xbf16>
      tpu.vector_store %arg10[%c0_27, %c0_28], %48 {strides = array<i32>} : memref<16x128xbf16, #tpu.memory_space<vmem>>, vector<16x128xbf16>,
    } else {
    }
    return
  }
  func.func @transform_0(%arg0: i32, %arg1: i32) -> (i32, i32, i32) {
    %c0_i32 = arith.constant 0 : i32
    %c0_i32_0 = arith.constant 0 : i32
    %c0_i32_1 = arith.constant 0 : i32
    return %arg0, %c0_i32, %c0_i32_0 : i32, i32, i32
  }
  func.func @transform_1(%arg0: i32, %arg1: i32) -> (i32, i32, i32) {
    %c0_i32 = arith.constant 0 : i32
    %c0_i32_0 = arith.constant 0 : i32
    %c0_i32_1 = arith.constant 0 : i32
    return %arg0, %c0_i32, %c0_i32_0 : i32, i32, i32
  }
  func.func @transform_2(%arg0: i32, %arg1: i32) -> (i32, i32, i32) {
    %c0_i32 = arith.constant 0 : i32
    %c0_i32_0 = arith.constant 0 : i32
    %c0_i32_1 = arith.constant 0 : i32
    return %arg0, %c0_i32, %c0_i32_0 : i32, i32, i32
  }
  func.func @transform_3(%arg0: i32, %arg1: i32) -> (i32, i32, i32) {
    %c0_i32 = arith.constant 0 : i32
    %c0_i32_0 = arith.constant 0 : i32
    %c0_i32_1 = arith.constant 0 : i32
    return %arg1, %c0_i32, %c0_i32_0 : i32, i32, i32
  }
  func.func @transform_4(%arg0: i32, %arg1: i32) -> (i32, i32, i32) {
    %c0_i32 = arith.constant 0 : i32
    %c0_i32_0 = arith.constant 0 : i32
    %c0_i32_1 = arith.constant 0 : i32
    return %arg1, %c0_i32, %c0_i32_0 : i32, i32, i32
  }
  func.func @transform_5(%arg0: i32, %arg1: i32) -> (i32, i32, i32) {
    %c0_i32 = arith.constant 0 : i32
    %c0_i32_0 = arith.constant 0 : i32
    %c0_i32_1 = arith.constant 0 : i32
    return %arg1, %c0_i32, %c0_i32_0 : i32, i32, i32
  }
  func.func @transform_6(%arg0: i32, %arg1: i32) -> (i32, i32, i32) {
    %c0_i32 = arith.constant 0 : i32
    %c0_i32_0 = arith.constant 0 : i32
    %c0_i32_1 = arith.constant 0 : i32
    return %arg1, %c0_i32, %c0_i32_0 : i32, i32, i32
  }
  func.func @transform_7(%arg0: i32, %arg1: i32) -> (i32, i32, i32) {
    %c0_i32 = arith.constant 0 : i32
    %c0_i32_0 = arith.constant 0 : i32
    %c0_i32_1 = arith.constant 0 : i32
    return %arg0, %c0_i32, %c0_i32_0 : i32, i32, i32
  }
}

</mosaic_0001>

<bundles_post_ra>
// kernel: gnn_forward.1
= control target key start
LH: loop header
LB: loop body
LE: loop exit
PB: predicated region body
PF: predicated region fallthrough
CT: control target
= control target key end

     0   :  { %s1654_s0 = inlined_call_operand.vmem [shape: bf16[2,16,128], index: 0, kind: input, shape index: {}]   ;;  %s1655_s1 = inlined_call_operand.vmem [shape: bf16[2,16,16], index: 1, kind: input, shape index: {}]   ;;  %s1656_s2 = inlined_call_operand.vmem [shape: f32[2,16,2], index: 2, kind: input, shape index: {}]   ;;  %s1657_s3 = inlined_call_operand.vmem [shape: bf16[2,128,256], index: 3, kind: input, shape index: {}]   ;;  %s1658_s4 = inlined_call_operand.vmem [shape: f32[2,3,256], index: 4, kind: input, shape index: {}]   ;;  %s1659_s5 = inlined_call_operand.vmem [shape: bf16[2,256,128], index: 5, kind: input, shape index: {}]   ;;  %s1660_s6 = inlined_call_operand.vmem [shape: f32[2,1,128], index: 6, kind: input, shape index: {}]   ;;  %s1661_s7 = inlined_call_operand.hbm [shape: f32[2,16,128], index: 7, kind: output, shape index: {}]  }
   0x1   :  { %1672 = sst [smem:[#allocation15_spill]] %s1661_s7 }
   0x2   :  { %12 = vsyncpa [#allocation4], 0 }
   0x3   :  { %14 = vsyncpa [#allocation4 + $0x1], 0  ;;  %s1435_s24 = smov 0   ;;  %s1437_s25 = smov 0  }
   0x4   :  { %s1439_s26 = smov 0   ;;  %s1441_s27 = smov 0  }
   0x5   :  { %s1443_s28 = smov 0   ;;  %s1445_s29 = smov 0  }
   0x6   :  { %s1447_s30 = smov 0   ;;  %s1449_s8 = smov 0  }
   0x7 LB: > { %1673 = sst [smem:[#allocation6_spill]] %s1358_s24  ;;  %s1064_s9 = sadd.s32 4294967295, %s1386_s8   ;;  %s1386_s8 = sphi %s1449_s8, %s20_s8   ;;  %s1382_s30 = sphi %s1447_s30, %s1694_s30   ;;  %s1378_s29 = sphi %s1445_s29, %s1693_s29   ;;  %s1374_s28 = sphi %s1443_s28, %s1692_s28   ;;  %s1370_s27 = sphi %s1441_s27, %s1697_s27   ;;  %s1366_s26 = sphi %s1439_s26, %s1690_s26   ;;  %s1362_s25 = sphi %s1437_s25, %s1696_s25   ;;  %s1358_s24 = sphi %s1435_s24, %s1695_s24  }
   0x8   : > { %1674 = sst [smem:[#allocation7_spill]] %s1366_s26  ;;  %s1065_s10 = sadd.s32 4294967294, %s1386_s8  }
   0x9   : > { %1675 = sst [smem:[#allocation8_spill]] %s1378_s29  ;;  %s29_s11 = sadd.s32 1, %s1378_s29 }
   0xa   : > { %1676 = sst [smem:[#allocation9_spill]] %s1382_s30  ;;  %p30_p0 = scmp.ge.s32.totalorder %s29_s11, 2 }
   0xb   : > { %1677 = sst [smem:[#allocation10_spill]] %s1386_s8  ;;  %s32_s12 = sadd.s32 1, %s1382_s30 }
   0xc   : > { %p231_p1 = scmp.ne.s32.totalorder %s1366_s26, %s1362_s25  ;;  %p232_p2 = scmp.eq.s32.totalorder %s1064_s9, 3 }
   0xd   : > { %s1699_s11 = smov (%p30_p0, %s29_s11), 0  ;;  %s1701_s12 = smov (!%p30_p0, %s32_s12), %s1382_s30 }
   0xe   : > { %1678 = sst [smem:[#allocation11_spill]] %s1699_s11  ;;  %p1484_p3 = por %p232_p2, %p231_p1 }
   0xf   : > { %p237_p4 = scmp.ne.s32.totalorder %s1362_s25, %s1358_s24  ;;  %p34_p5 = scmp.ge.s32.totalorder %s1701_s12, 2 }
  0x10   : > { %p238_p6 = scmp.eq.s32.totalorder %s1065_s10, 3  ;;  %p1068_p7 = scmp.ge.s32.totalorder %s1386_s8, 1 }
  0x11   : > { %p310_p8 = scmp.lt.s32.totalorder %s1386_s8, 5  ;;  %s1703_s12 = smov (%p34_p5, %s1701_s12), 0 }
  0x12   : > { %1680 = sst [smem:[#allocation12_spill]] %s1703_s12  ;;  %p1494_p9 = por %p238_p6, %p237_p4 }
  0x13   : > { %p311_p10 = pnand %p1068_p7, %p310_p8  ;;  %s218_s15 = ssub.s32 %s1382_s30, %s1703_s12 }
  0x14   : > { %s1681_s14 = scalar_select %p1494_p9, 1, 0 }
  0x15   : > { %s221_s16 = sadd.s32 1, %s1366_s26  ;;  %p219_p11 = scmp.eq.s32.totalorder %s218_s15, 0 }
  0x16   : > { %1682 = sst [smem:[#allocation13_spill]] %s1681_s14  ;;  %314 = sbr.rel (%p311_p10) target bundleno = 700 (0x2bc), region = 48 }
  0x17   : > { %s1502_s17 = scalar_select %p219_p11, %s1366_s26, %s221_s16  }
  0x18   : > { %s1665_s18 = sand.u32 (!%p311_p10), 1, %s1362_s25   ;;  %p370_p12 = scmp.lt.s32.totalorder (!%p311_p10), %s1374_s28, 1 }
  0x19   : > { %1683 = sst [smem:[#allocation14_spill]] %s1502_s17  ;;  %s1069_s19 = sshll.u32 (!%p311_p10), %s1665_s18, 4 }
  0x1a   : > { %p385_p13 = scmp.lt.s32.totalorder (!%p311_p10), %s1370_s27, 1  ;;  %s1545_s16 = scalar_lea.vmem (!%p311_p10), [#allocation3], %s1069_s19 }
  0x1b   : > { %s371_s20 = scalar_select %p370_p12, %s1374_s28, 1 }
  0x1c   : > { %s1511_s21 = scalar_select %p385_p13, %s1370_s27, 1 }
  0x1d   : > { %s1128_s22 = sshll.u32 %s371_s20, 3  ;;  %s1130_s23 = sshll.u32 %s371_s20, 4 }
  0x1e   : > { %s374_s15 = scalar_lea.vmem %s1654_s0, %s1128_s22  ;;  %s379_s11 = scalar_lea.vmem %s1655_s1, %s1128_s22 }
  0x1f   : > { %s1522_s18 = scalar_lea.vmem %s1656_s2, %s1130_s23  ;;  %s1131_s17 = sshll.u32 %s1511_s21, 7 }
  0x20   : > { %s1528_s24 = scalar_lea.vmem %s1657_s3, %s1131_s17  ;;  %s1132_s20 = sshll.u32 %s1511_s21, 3 }
  0x21   : > { %s1534_s9 = scalar_lea.vmem %s1658_s4, %s1132_s20  ;;  %s1539_s22 = scalar_lea.vmem %s1659_s5, %s1131_s17 }
  0x22   : > { %s402_s23 = scalar_lea.vmem %s1660_s6, %s1511_s21  ;;  %p1082_p0 = scmp.ne.s32.totalorder %s1370_s27, 0 }
  0x24   : > { %407 = sbr.rel (%p1082_p0) target bundleno = 43 (0x2b), region = 52 }
  0x29   : > { %v408_v0 = vld [vmem:[%s374_s15] sm:$0xff]  }
  0x2a   : > { %410 = vst [vmem:[#allocation2] sm:$0xff] %v408_v0  }
  0x2b PF: > { %v1388_v2 = vmov 0.0   ;;  %v1253_v3 = vld [vmem:[%s379_s11] sm:$0xff]   ;;  %vm1389_vm0 = vmmov 0   ;;  %vm427_vm1 = vcmask 130048   ;;  %v1254_v4 = vld [vmem:[%s1528_s24 + $0x74] ss:$8 sps:$4 sm:$0xff]   ;;  %v486_v45 = vlaneseq }
  0x2c   : > { %1166 = vmatprep.subr.bf16.mxu0 %v1388_v2  ;;  %1168 = vmatprep.mubr.msk.bf16.mxu0 %vm1389_vm0, %v1388_v2  ;;  %v1256_v5 = vld [vmem:[%s1528_s24 + $0x70] ss:$8 sps:$4 sm:$0xff]   ;;  %v1257_v6 = vld [vmem:[%s1528_s24 + $0x64] ss:$8 sps:$4 sm:$0xff]   ;;  %v1259_v7 = vld [vmem:[%s1528_s24 + $0x60] ss:$8 sps:$4 sm:$0xff]  }
  0x2d   : > { %661 = vmatprep.subr.bf16.mxu1 %v1254_v4  ;;  %v1260_v8 = vld [vmem:[%s1528_s24 + $0x54] ss:$8 sps:$4 sm:$0xff]   ;;  %v1262_v9 = vld [vmem:[%s1528_s24 + $0x50] ss:$8 sps:$4 sm:$0xff]   ;;  %v1263_v10 = vld [vmem:[%s1528_s24 + $0x44] ss:$8 sps:$4 sm:$0xff]  }
  0x2e   : > { %662 = vmatpush1.bf16.msra.mxu1 %v1256_v5  ;;  %v1265_v11 = vld [vmem:[%s1528_s24 + $0x40] ss:$8 sps:$4 sm:$0xff]   ;;  %v1266_v12 = vld [vmem:[%s1528_s24 + $0x34] ss:$8 sps:$4 sm:$0xff]   ;;  %v1268_v13 = vld [vmem:[%s1528_s24 + $0x30] ss:$8 sps:$4 sm:$0xff]  }
  0x2f   : > { %663 = vmatprep.subr.bf16.mxu1 %v1257_v6  ;;  %v1269_v14 = vld [vmem:[%s1528_s24 + $0x24] ss:$8 sps:$4 sm:$0xff]   ;;  %v1271_v15 = vld [vmem:[%s1528_s24 + $0x20] ss:$8 sps:$4 sm:$0xff]   ;;  %v1272_v16 = vld [vmem:[%s1528_s24 + $0x14] ss:$8 sps:$4 sm:$0xff]  }
  0x30   : > { %v1274_v17 = vld [vmem:[%s1528_s24 + $0x10] ss:$8 sps:$4 sm:$0xff]   ;;  %v1275_v18 = vld [vmem:[%s1528_s24 + $0x4] ss:$8 sps:$4 sm:$0xff]   ;;  %v1277_v19 = vld [vmem:[%s1528_s24] ss:$8 sps:$4 sm:$0xff]  }
  0x31   : > { %v1252_v1 = vld [vmem:[#allocation2] sm:$0xff]   ;;  %v1390_v20 = vmov 0   ;;  %v1278_v22 = vld [vmem:[%s1539_s22 + $0x78] sm:$0xff]   ;;  %v1391_v23 = vmov 1   ;;  %v1280_v25 = vld [vmem:[%s1539_s22 + $0x70] sm:$0xff]   ;;  %v487_v46 = vshrl.u32 %v486_v45, 7 }
  0x32   : > { %1167 = vmatpush3.bf16.msra.mxu0 %v1252_v1  ;;  %664 = vmatpush1.bf16.msra.mxu1 %v1259_v7  ;;  %v472_v21 = vld [vmem:[%s1522_s18] sm:$0xff]  ;;  %v1279_v24 = vld [vmem:[%s1539_s22 + $0x38] sm:$0xff]   ;;  %v473_v26 = vld [vmem:[%s1522_s18 + $0x8] sm:$0xff]  ;;  %p1119_p1 = scmp.ne.s32.totalorder %s1370_s27, 1 }
  0x33   : > { %665 = vmatprep.subr.bf16.mxu1 %v1260_v8  ;;  %693 = vmatprep.mubr.bf16.mxu1 %v1390_v20  ;;  %v1281_v27 = vld [vmem:[%s1539_s22 + $0x30] sm:$0xff]   ;;  %v1282_v28 = vld [vmem:[%s1539_s22 + $0x68] sm:$0xff]   ;;  %v1284_v30 = vld [vmem:[%s1539_s22 + $0x60] sm:$0xff]   ;;  %v522_v47 = vsub.s32 5, %v487_v46  ;;  %v492_v48 = vsub.s32 4, %v487_v46  ;;  %v518_v49 = vsub.s32 1, %v487_v46 }
  0x34   : > { %1249 = vset.pattern.permute.xlu0 %v1390_v20  ;;  %1250 = vset.pattern.permute.xlu1 %v1391_v23  ;;  %v1283_v29 = vld [vmem:[%s1539_s22 + $0x28] sm:$0xff]   ;;  %v1285_v31 = vld [vmem:[%s1539_s22 + $0x20] sm:$0xff]   ;;  %v1286_v32 = vld [vmem:[%s1539_s22 + $0x58] sm:$0xff]   ;;  %v488_v50 = vsub.s32 0, %v487_v46  ;;  %v548_v60 = vsub.s32 6, %v487_v46  ;;  %v544_v63 = vsub.s32 2, %v487_v46 }
  0x35   : > { %1169 = vmatmul.mubr.msk.bf16.vlgmr.msra.gmra.mxu0 %vm427_vm1, %v1253_v3  ;;  %477 = vperm.xlu0 %1249, %v472_v21   ;;  %v1287_v33 = vld [vmem:[%s1539_s22 + $0x18] sm:$0xff]   ;;  %v1288_v39 = vld [vmem:[%s1539_s22 + $0x50] sm:$0xff]   ;;  %v1290_v41 = vld [vmem:[%s1539_s22 + $0x48] sm:$0xff]  }
  0x36   : > { %666 = vmatpush1.bf16.msra.mxu1 %v1262_v9  ;;  %509 = vperm.xlu1 %1250, %v472_v21   ;;  %v1289_v40 = vld [vmem:[%s1539_s22 + $0x10] sm:$0xff]   ;;  %v1291_v42 = vld [vmem:[%s1539_s22 + $0x8] sm:$0xff]   ;;  %v1292_v43 = vld [vmem:[%s1539_s22 + $0x40] sm:$0xff]  }
  0x37   : > { %667 = vmatprep.subr.bf16.mxu1 %v1263_v10  ;;  %1144 = vmatprep.subr.bf16.mxu0 %v1278_v22  ;;  %v1293_v44 = vld [vmem:[%s1539_s22] sm:$0xff]  }
  0x38   : > { %1145 = vmatpush3.bf16.msra.mxu0 %v1279_v24  ;;  %v474_v51 = vld [vmem:[%s1534_s9] sm:$0x77] }
  0x39   : > { %1146 = vmatprep.subr.bf16.mxu0 %v1280_v25  ;;  %482 = vperm.xlu0 %1249, %v473_v26   ;;  %v523_v52 = vrot.slane %v474_v51, %v522_v47  ;;  %v493_v53 = vrot.slane %v474_v51, %v492_v48  ;;  %v519_v54 = vrot.slane %v474_v51, %v518_v49 }
  0x3a   : > { %668 = vmatpush1.bf16.msra.mxu1 %v1265_v11  ;;  %513 = vperm.xlu1 %1250, %v473_v26   ;;  %v489_v56 = vrot.slane %v474_v51, %v488_v50  ;;  %v549_v4 = vrot.slane %v474_v51, %v548_v60  ;;  %v545_v7 = vrot.slane %v474_v51, %v544_v63 }
  0x3b   : > { %669 = vmatprep.subr.bf16.mxu1 %v1266_v12  ;;  %v533_v58 = vrot.slane %v523_v52, %v518_v49  ;;  %v503_v59 = vrot.slane %v493_v53, %v488_v50  ;;  %v529_v61 = vrot.slane %v519_v54, %v518_v49 }
  0x3c   : > { %1147 = vmatpush3.bf16.msra.mxu0 %v1281_v27  ;;  %v499_v62 = vrot.slane %v489_v56, %v488_v50 }
  0x3d   : > { %1148 = vmatprep.subr.bf16.mxu0 %v1282_v28  ;;  %1251 = vset.pattern.permute.xlu0 %v1391_v23 }
  0x3e   : > { %670 = vmatpush1.bf16.msra.mxu1 %v1268_v13  ;;  %v559_v13 = vrot.slane %v549_v4, %v544_v63 }
  0x3f   : > { %671 = vmatprep.subr.bf16.mxu1 %v1269_v14 }
  0x40   : > { %1149 = vmatpush3.bf16.msra.mxu0 %v1283_v29 }
  0x41   : > { %1150 = vmatprep.subr.bf16.mxu0 %v1284_v30 }
  0x42   : > { %672 = vmatpush1.bf16.msra.mxu1 %v1271_v15  ;;  %v555_v15 = vrot.slane %v545_v7, %v544_v63 }
  0x43   : > { %673 = vmatprep.subr.bf16.mxu1 %v1272_v16 }
  0x44   : > { %1151 = vmatpush3.bf16.msra.mxu0 %v1285_v31 }
  0x45   : > { %1152 = vmatprep.subr.bf16.mxu0 %v1286_v32 }
  0x46   : > { %674 = vmatpush1.bf16.msra.mxu1 %v1274_v17 }
  0x47   : > { %675 = vmatprep.subr.bf16.mxu1 %v1275_v18 }
  0x48   : > { %1153 = vmatpush3.bf16.msra.mxu0 %v1287_v33 }
  0x49   : > { %1154 = vmatprep.subr.bf16.mxu0 %v1288_v39 }
  0x4a   : > { %676 = vmatpush1.bf16.msra.mxu1 %v1277_v19 }
  0x4c   : > { %1155 = vmatpush3.bf16.msra.mxu0 %v1289_v40 }
  0x4d   : > { %1156 = vmatprep.subr.bf16.mxu0 %v1290_v41 }
  0x50   : > { %1157 = vmatpush3.bf16.msra.mxu0 %v1291_v42 }
  0x51   : > { %1158 = vmatprep.subr.bf16.mxu0 %v1292_v43 }
  0x54   : > { %1159 = vmatpush3.bf16.msra.mxu0 %v1293_v44 }
  0xb0   : > { %v478_v57 = vpop.permute.xlu0 %477 }
  0xb1   : > { %v510_v55 = vpop.permute.xlu1 %509  ;;  %v505_v3 = vmul.f32 %v503_v59, %v478_v57  ;;  %v504_v6 = vmul.f32 %v499_v62, %v478_v57 }
  0xb2   : > { %v535_v2 = vmul.f32 %v533_v58, %v510_v55  ;;  %v534_v5 = vmul.f32 %v529_v61, %v510_v55 }
  0xb4   : > { %v483_v1 = vpop.permute.xlu0 %482  ;;  %v539_v10 = vadd.f32 %v535_v2, %v505_v3  ;;  %v538_v14 = vadd.f32 %v534_v5, %v504_v6 }
  0xb5   : > { %v514_v0 = vpop.permute.xlu1 %513  ;;  %v506_v9 = vmul.f32 %v499_v62, %v483_v1  ;;  %v507_v12 = vmul.f32 %v503_v59, %v483_v1 }
  0xb6   : > { %v536_v8 = vmul.f32 %v529_v61, %v514_v0  ;;  %v537_v11 = vmul.f32 %v533_v58, %v514_v0  ;;  %v561_v19 = vadd.f32 %v559_v13, %v539_v10  ;;  %v560_v20 = vadd.f32 %v555_v15, %v538_v14 }
  0xb8   : > { %v540_v16 = vadd.f32 %v536_v8, %v506_v9  ;;  %v541_v18 = vadd.f32 %v537_v11, %v507_v12 }
  0xba   : > { %v562_v22 = vadd.f32 %v555_v15, %v540_v16  ;;  %v563_v26 = vadd.f32 %v559_v13, %v541_v18 }
  0xf5   : > { %v465_v34 = vpop.f32.mrf.mxu0 }
  0xf7   : > { %v1170_v35 = vpop.f32.mrf.mxu0 }
  0xf9   : > { %v468_v36 = vpop.f32.mrf.mxu0 }
  0xfa   : > { %v564_v37 = vpack.c.bf16 %v468_v36, %v465_v34 }
  0xfb   : > { %v1171_v38 = vpop.f32.mrf.mxu0 }
  0xfc   : > { %694 = vmatmul.mubr.bf16.vlgmr.msra.gmra.mxu1 %v564_v37  ;;  %v1102_v37 = vld [vmem:[%s402_s23] ss:$0 sm:$0xff] }
 0x1bc   : > { %v695_v17 = vpop.f32.mrf.mxu1 }
 0x1bd   : > { %v696_v27 = vadd.f32 %v695_v17, %v560_v20 }
 0x1be   : > { %v697_v21 = vpop.f32.mrf.mxu1 }
 0x1bf   : > { %v698_v24 = vadd.f32 %v697_v21, %v561_v19  ;;  %v704_v33 = vmax.f32 %v696_v27, 0.0 }
 0x1c0   : > { %v699_v23 = vpop.f32.mrf.mxu1 }
 0x1c1   : > { %v700_v25 = vadd.f32 %v699_v23, %v562_v22  ;;  %v705_v31 = vmax.f32 %v698_v24, 0.0 }
 0x1c2   : > { %v701_v28 = vpop.f32.mrf.mxu1 }
 0x1c3   : > { %v702_v29 = vadd.f32 %v701_v28, %v563_v26  ;;  %v706_v30 = vmax.f32 %v700_v25, 0.0 }
 0x1c5   : > { %v707_v32 = vmax.f32 %v702_v29, 0.0  ;;  %v708_v35 = vpack.c.bf16 %v706_v30, %v704_v33 }
 0x1c7   : > { %v709_v34 = vpack.c.bf16 %v707_v32, %v705_v31 }
 0x1c9   : > { %877 = vmatprep.mubr.bf16.mxu0 %v709_v34 }
 0x1ca   : > { %878 = vmatmul.mubr.bf16.vlgmr.msra.gmra.mxu0 %v708_v35 }
 0x28a   : > { %v1160_v36 = vpop.f32.mrf.mxu0 }
 0x28c   : > { %v1161_v38 = vpop.f32.mrf.mxu0 }
 0x28d   : > { %v1162_v39 = vadd.f32 %v1161_v38, %v1160_v36 }
 0x28e   : > { %v1163_v40 = vpop.f32.mrf.mxu0 }
 0x28f   : > { %v880_v41 = vadd.f32 %v1162_v39, %v1102_v37  ;;  %889 = sbr.rel (%p1119_p1) target bundleno = 662 (0x296), region = 56 }
 0x290   : > { %v1164_v42 = vpop.f32.mrf.mxu0 }
 0x291   : > { %v1165_v43 = vadd.f32 %v1164_v42, %v1163_v40 }
 0x293   : > { %v883_v44 = vadd.f32 %v1165_v43, %v1102_v37 }
 0x294   : > { %890 = vst [vmem:[%s1545_s16] sm:$0xff] %v880_v41 }
 0x295   : > { %891 = vst [vmem:[%s1545_s16 + $0x8] sm:$0xff] %v883_v44 }
 0x296 PF: > { %p1120_p2 = scmp.ge.s32.totalorder %s1370_s27, 1 }
 0x298   : > { %895 = sbr.rel (%p1120_p2) target bundleno = 674 (0x2a2), region = 60 }
 0x29d   : > { %v896_v45 = vmax.f32 %v880_v41, 0.0  ;;  %v897_v46 = vmax.f32 %v883_v44, 0.0 }
 0x29f   : > { %v1140_v47 = vpack.c.bf16 %v897_v46, %v896_v45 }
 0x2a1   : > { %1141 = vst [vmem:[#allocation2] sm:$0xff] %v1140_v47  }
 0x2a2 PF: > { %s1136_s26 = sshll.u32 %s1374_s28, 8  ;;  %s1684_s14 = sld [smem:[#allocation15_spill]] }
 0x2a3   : > { %s922_s18 = sshll.u32 %s1545_s16, 4  ;;  %s1685_s27 = sand.u32 1, %s1362_s25   ;;  %s1599_s18 = int_to_ptr.vmem [resolvable:$true] %s922_s18 }
 0x2a4   : > { %s1603_s19 = scalar_lea.sflag [#allocation4], %s1685_s27  ;;  %s1294_s21 = scalar_lea.vmem %s1599_s18, 256 }
 0x2a5   : > { %p1295_p4 = scmp.ne.s32.totalorder %s1599_s18, %s1294_s21  ;;  %s1392_s28 = smov [#allocation3]  }
 0x2a6   : > { %s1298_s15 = sshll.u32 %s1392_s28, 4  ;;  %s1299_s15 = int_to_ptr.vmem [resolvable:$false] %s1298_s15 }
 0x2a7   : > { %p1296_p5 = pnand %p1295_p4, %p1484_p3  ;;  %s1300_s20 = scalar_lea.vmem %s1299_s15, 512 }
 0x2a8   : > { %s1596_s17 = scalar_lea.hbm %s1684_s14, %s1136_s26  ;;  %p1301_p7 = scmp.lt.s32.totalorder %s1599_s18, %s1299_s15 }
 0x2a9   : > { %p1297_p6 = pneg %p1296_p5  ;;  %p1302_p8 = scmp.lt.s32.totalorder %s1300_s20, %s1294_s21 }
 0x2ab   : > { %p1303_p10 = por %p1302_p8, %p1301_p7 }
 0x2ad   : > { %p1304_p11 = pnand %p1303_p10, %p1297_p6 }
 0x2af   : > { %1307 = shalt.err (!%p1304_p11)
}
 0x2b0   : > { %s1308_s9 = scalar_lea.hbm %s1596_s17, 256  ;;  %s1312_s22 = scalar_lea.hbm %s1684_s14, 512 }
 0x2b1   : > { %p1309_p12 = scmp.ne.s32.totalorder %s1596_s17, %s1308_s9  ;;  %p1313_p1 = scmp.lt.s32.totalorder %s1596_s17, %s1684_s14 }
 0x2b2   : > { %p1314_p2 = scmp.lt.s32.totalorder %s1312_s22, %s1308_s9 }
 0x2b3   : > { %p1310_p13 = pnand %p1309_p12, %p1484_p3 }
 0x2b4   : > { %p1315_p4 = por %p1314_p2, %p1313_p1 }
 0x2b5   : > { %p1311_p0 = pneg %p1310_p13 }
 0x2b7   : > { %p1316_p5 = pnand %p1315_p4, %p1311_p0 }
 0x2b9   : > { %1319 = shalt.err (!%p1316_p5)
}
 0x2ba   : > { %s1393_s23 = smov 128   ;;  %s1394_s16 = smov 8  }
 0x2bb   : > { %1172 = dma.vmem_to_hbm [thread:$0]  (%p1484_p3), %s1599_s18, 256, %s1596_s17, %s1603_s19, %s1393_s23, %s1393_s23, %s1394_s16  }
 0x2bc PF: > { %s1686_s7 = sld [smem:[#allocation10_spill]] }
 0x2bd   : > { %s1687_s24 = sld [smem:[#allocation6_spill]] }
 0x2c2   : > { %p1178_p6 = scmp.ge.s32.totalorder %s1686_s7, 2 }
 0x2c3   : > { %s937_s8 = sand.u32 1, %s1687_s24  }
 0x2c4   : > { %p1175_p7 = pnand %p1178_p6, %p1494_p9  ;;  %s938_s11 = scalar_lea.sflag [#allocation4], %s937_s8 }
 0x2c6   : > { %p1176_p8 = pneg %p1175_p7 }
 0x2c8   : > { %1353 = dma.done.wait (%p1176_p8), %s938_s11, 256  }
 0x2c9   : > { %1355 = vsyncadd (%p1176_p8), %s938_s11, 4294967040  ;;  %s20_s8 = sadd.s32 1, %s1686_s7   ;;  %s1689_s27 = sld [smem:[#allocation7_spill]] }
 0x2ca   : > { %p17_p10 = scmp.ge.s32.totalorder %s20_s8, 6   ;;  %s1690_s26 = sld [smem:[#allocation14_spill]] }
 0x2cb   : > { %s1691_s13 = sld [smem:[#allocation8_spill]]  ;;  %s1695_s24 = smov %s1362_s25 }
 0x2cc   : > { %s1692_s28 = sld [smem:[#allocation9_spill]] }
 0x2cd   : > { %s1693_s29 = sld [smem:[#allocation11_spill]]  ;;  %19 = sbr.rel (!%p17_p10) target bundleno = 7 (0x7), region = 113 }
 0x2ce   : > { %s1694_s30 = sld [smem:[#allocation12_spill]] }
 0x2cf   : > { %s1696_s25 = smov %s1689_s27 }
 0x2d1   : > { %s1697_s27 = smov %s1691_s13 }
 0x2d2   :  { %943 = vsyncpa [#allocation4], 1 }
 0x2d3   :  { %945 = vsyncpa [#allocation4 + $0x1], 1 }

</bundles_post_ra>
